<compile_context>
chip_gen: v7x
topology: tpu7x:2x2x1
jax: 0.10.0
libtpu: 0.0.40
codegen_flags: <defaults>
</compile_context>

<pallas_src>
import functools
import math

import jax
import jax.numpy as jnp
from jax import lax
from jax.experimental import pallas as pl
from jax.experimental.pallas import tpu as pltpu


def _silu(x):
    return x * jax.nn.sigmoid(x)


def _round_up(x, m):
    return ((x + m - 1) // m) * m


# ---------------------------------------------------------------------------
# Pallas kernel: grid over edge tiles, (N,3) accumulator resident in VMEM.
# ---------------------------------------------------------------------------
def equivariant_update_kernel(
    rc_ref,          # (Et, 2)  int32  [row | col] for this edge tile
    coord_diff_ref,  # (Et, 3)  f32
    edge_attr_ref,   # (Et, ed) f32
    edge_mask_ref,   # (Et, 1)  f32
    h_ref,           # (N, H)   f32   (resident across the grid)
    coord_ref,       # (N, 3)   f32   (resident)
    node_mask_ref,   # (N, 1)   f32   (resident)
    w0n_ref,         # (H, 2H)  layer-0 weights [W_row | W_col] (resident)
    w0e_ref,         # (ed, H)  layer-0 weights for edge_attr   (resident)
    b01_ref,         # (2, H)   [b0 ; b1]                       (resident)
    w1_ref,          # (H, H)                                    (resident)
    w2t_ref,         # (1, H)   final Linear(H,1,bias=False), transposed
    o_ref,           # (N, 3)   output (resident across the edge grid)
    hstack_ref,      # (2N, H)  bf16 scratch: [h @ W_row ; h @ W_col]
    acc_ref,         # (N, 3)   f32 scratch: running scatter-add
    deg_ref,         # (N, 1)   f32 scratch: running in-degree ('mean' only)
    *, tanh, coords_range, normalization_factor, aggregation_method):
    f32 = jnp.float32
    bf16 = jnp.bfloat16
    t = pl.program_id(0)
    Et = rc_ref.shape[0]
    N, H = h_ref.shape

    # ---- grid step 0: node-side layer-0 projection + accumulator init -------
    @pl.when(t == 0)
    def _init():
        hcat = jnp.dot(h_ref[...], w0n_ref[...],
                       preferred_element_type=f32)            # (N, 2H)
        hstack_ref[0:N, :] = hcat[:, :H].astype(bf16)
        hstack_ref[N:2 * N, :] = hcat[:, H:].astype(bf16)
        acc_ref[...] = jnp.zeros_like(acc_ref)
        deg_ref[...] = jnp.zeros_like(deg_ref)

    # ---- one-hot gather matrix for this edge tile (0/1 exact in bf16) -------
    # Padded edges carry the sentinel index N -> all-zero one-hot row -> they
    # contribute nothing to the gather, the scatter, or the degree.
    rc = rc_ref[...]
    node_ids = lax.broadcasted_iota(jnp.int32, (Et, N), 1)
    R = (rc[:, 0:1] == node_ids).astype(bf16)          # (Et, N): gather/scatter by row
    C = (rc[:, 1:2] == node_ids).astype(bf16)          # (Et, N): gather by col
    G = jnp.concatenate([R, C], axis=1)                # (Et, 2N)

    # ---- coord_mlp layer 0: fused gather of the node-side projections -------
    z = jnp.dot(G, hstack_ref[...], preferred_element_type=f32)   # (Et, H)
    ea = edge_attr_ref[...]
    if ea.shape[1] == 1:
        z = z + ea * w0e_ref[...]                       # (Et,1)*(1,H) on the VPU
    else:
        z = z + jnp.dot(ea, w0e_ref[...], preferred_element_type=f32)
    z = _silu(z + b01_ref[0:1, :])

    # ---- coord_mlp layer 1 ----------------------------------------------------
    z = jnp.dot(z.astype(bf16), w1_ref[...].astype(bf16),
                preferred_element_type=f32) + b01_ref[1:2, :]
    z = _silu(z)

    # ---- final Linear(H, 1, bias=False): VPU multiply + lane reduce ----------
    s = jnp.sum(z * w2t_ref[...], axis=-1, keepdims=True)          # (Et, 1)
    if tanh:
        s = jnp.tanh(s) * coords_range

    trans = coord_diff_ref[...] * s * edge_mask_ref[...]            # (Et, 3)

    # ---- scatter-add by row: acc += R^T @ trans (TN dot, no (N,E) one-hot) ---
    tn_dims = (((0,), (0,)), ((), ()))
    if aggregation_method == 'mean':
        # Fuse the per-node in-degree as a 4th lane of the scatter matmul
        # (degree ignores edge_mask, matching the torch op).
        rhs = jnp.concatenate([trans, jnp.ones((Et, 1), f32)],
                              axis=1).astype(bf16)                   # (Et, 4)
        scat = lax.dot_general(R, rhs, tn_dims,
                               preferred_element_type=f32)           # (N, 4)
        acc_ref[...] += scat[:, 0:3]
        deg_ref[...] += scat[:, 3:4]
    else:
        acc_ref[...] += lax.dot_general(R, trans.astype(bf16), tn_dims,
                                        preferred_element_type=f32)  # (N, 3)

    # ---- last grid step: normalize, add to coords, apply node mask ----------
    @pl.when(t == pl.num_programs(0) - 1)
    def _finalize():
        agg = acc_ref[...]
        if aggregation_method == 'sum':
            agg = agg / normalization_factor
        else:  # 'mean' -- 0/0 = NaN for isolated nodes, same as the torch op
            agg = agg / deg_ref[...]
        o_ref[...] = ((coord_ref[...] + agg) * node_mask_ref[...]).astype(o_ref.dtype)


# ---------------------------------------------------------------------------
# Wrapper
# ---------------------------------------------------------------------------
def equivariant_update(h, coord, row, col, coord_diff, edge_attr,
                       edge_mask, node_mask, params, *,
                       tanh=False, coords_range=10.0,
                       normalization_factor=1.0, aggregation_method='sum',
                       e_tile=None):
    w0, b0, w1, b1, w2 = params
    N, H = h.shape
    E = int(row.shape[0])
    ed = int(edge_attr.shape[1])
    f32 = jnp.float32

    # Repack weights: layer-0 acts on cat([h[row], h[col], edge_attr]).
    w0n = jnp.concatenate([w0[:H], w0[H:2 * H]], axis=1).astype(f32)   # (H, 2H)
    w0e = w0[2 * H:].astype(f32)                                        # (ed, H)
    b01 = jnp.stack([b0, b1], axis=0).astype(f32)                       # (2, H)
    w2t = w2.reshape(1, H).astype(f32)                                  # (1, H)

    rc = jnp.stack([row.astype(jnp.int32), col.astype(jnp.int32)], axis=1)  # (E, 2)
    edge_mask = jnp.ones((E, 1), f32) if edge_mask is None else edge_mask.astype(f32)
    node_mask = jnp.ones((N, 1), f32) if node_mask is None else node_mask.astype(f32)
    coord_diff = coord_diff.astype(f32)
    edge_attr = edge_attr.astype(f32)

    # Edge tile: multiple of 8 sublanes; pad trailing edges with the out-of-range
    # node id N so they produce all-zero one-hot rows (no gather / scatter / degree).
    if e_tile is None:
        e_tile = 512 if E > 512 else _round_up(max(E, 8), 8)
    e_tile = _round_up(int(e_tile), 8)
    E_pad = _round_up(max(E, e_tile), e_tile)
    if E_pad > E:
        pad = E_pad - E
        rc = jnp.concatenate([rc, jnp.full((pad, 2), N, jnp.int32)], axis=0)
        coord_diff = jnp.concatenate([coord_diff, jnp.zeros((pad, 3), f32)], axis=0)
        edge_attr = jnp.concatenate([edge_attr, jnp.zeros((pad, ed), f32)], axis=0)
        edge_mask = jnp.concatenate([edge_mask, jnp.zeros((pad, 1), f32)], axis=0)
    n_tiles = E_pad // e_tile

    kernel = functools.partial(
        equivariant_update_kernel,
        tanh=bool(tanh),
        coords_range=float(coords_range),
        normalization_factor=float(normalization_factor),
        aggregation_method=aggregation_method)

    def edge_spec(w):
        return pl.BlockSpec((e_tile, w), lambda t: (t, 0))

    def fixed_spec(shape):
        return pl.BlockSpec(shape, lambda t: (0, 0))

    grid_spec = pltpu.PrefetchScalarGridSpec(
        num_scalar_prefetch=0,
        grid=(n_tiles,),
        in_specs=[
            edge_spec(2),            # rc (row | col)
            edge_spec(3),            # coord_diff
            edge_spec(ed),           # edge_attr
            edge_spec(1),            # edge_mask
            fixed_spec((N, H)),      # h
            fixed_spec((N, 3)),      # coord
            fixed_spec((N, 1)),      # node_mask
            fixed_spec((H, 2 * H)),  # w0n
            fixed_spec((ed, H)),     # w0e
            fixed_spec((2, H)),      # b01
            fixed_spec((H, H)),      # w1
            fixed_spec((1, H)),      # w2t
        ],
        out_specs=pl.BlockSpec((N, 3), lambda t: (0, 0)),
        scratch_shapes=[
            pltpu.VMEM((2 * N, H), jnp.bfloat16),   # resident node-side projections
            pltpu.VMEM((N, 3), jnp.float32),        # scatter-add accumulator
            pltpu.VMEM((N, 1), jnp.float32),        # degree accumulator ('mean')
        ])

    return pl.pallas_call(
        kernel,
        out_shape=jax.ShapeDtypeStruct((N, 3), coord.dtype),
        grid_spec=grid_spec,
        compiler_params=pltpu.CompilerParams(
            dimension_semantics=("arbitrary",),     # output/scratch carry across tiles
            vmem_limit_bytes=32 * 1024 * 1024),     # fits v5e/v6e/v7x; e_tile sized to this
    )(rc, coord_diff, edge_attr, edge_mask, h.astype(f32), coord.astype(f32),
      node_mask, w0n, w0e, b01, w1.astype(f32), w2t)


# ---------------------------------------------------------------------------
# Pure-JAX reference (mirrors the torch module) for a correctness check
# ---------------------------------------------------------------------------
def reference(h, coord, row, col, coord_diff, edge_attr, edge_mask, node_mask,
              params, *, tanh, coords_range, normalization_factor,
              aggregation_method):
    w0, b0, w1, b1, w2 = params
    x = jnp.concatenate([h[row], h[col], edge_attr], axis=1)
    z = jax.nn.silu(x @ w0 + b0)
    z = jax.nn.silu(z @ w1 + b1)
    s = z @ w2
    if tanh:
        s = jnp.tanh(s) * coords_range
    trans = coord_diff * s
    if edge_mask is not None:
        trans = trans * edge_mask
    agg = jnp.zeros_like(coord).at[row].add(trans)
    if aggregation_method == 'sum':
        agg = agg / normalization_factor
    else:
        norm = jnp.zeros_like(coord).at[row].add(jnp.ones_like(trans))
        agg = agg / norm
    out = coord + agg
    if node_mask is not None:
        out = out * node_mask
    return out


if __name__ == "__main__":
    hidden_nf = 32
    n_nodes = 8
    edges_in_d = 1
    tanh = True
    coords_range = 10.0
    normalization_factor = 100.0

    # Fully-connected graph without self-loops -> E = N*(N-1) = 56 edges.
    rows, cols = [], []
    for i in range(n_nodes):
        for j in range(n_nodes):
            if i != j:
                rows.append(i)
                cols.append(j)
    row = jnp.asarray(rows, dtype=jnp.int32)
    col = jnp.asarray(cols, dtype=jnp.int32)
    n_edges = int(row.shape[0])

    key = jax.random.PRNGKey(0)
    kh, kc, ke, kem, k0, kb0, k1, kb1, k2 = jax.random.split(key, 9)

    h = jax.random.normal(kh, (n_nodes, hidden_nf), dtype=jnp.float32)
    coord = jax.random.normal(kc, (n_nodes, 3), dtype=jnp.float32)
    coord_diff = coord[row] - coord[col]
    edge_attr = jax.random.normal(ke, (n_edges, edges_in_d), dtype=jnp.float32)
    edge_mask = (jax.random.uniform(kem, (n_edges, 1)) > 0.2).astype(jnp.float32)
    node_mask = jnp.ones((n_nodes, 1), dtype=jnp.float32).at[-1, 0].set(0.0)

    # Parameters: torch nn.Linear default init; last layer xavier_uniform(gain=1e-3).
    in0 = 2 * hidden_nf + edges_in_d
    k_in0 = 1.0 / math.sqrt(in0)
    k_in1 = 1.0 / math.sqrt(hidden_nf)
    w0 = jax.random.uniform(k0, (in0, hidden_nf), minval=-k_in0, maxval=k_in0,
                            dtype=jnp.float32)
    b0 = jax.random.uniform(kb0, (hidden_nf,), minval=-k_in0, maxval=k_in0,
                            dtype=jnp.float32)
    w1 = jax.random.uniform(k1, (hidden_nf, hidden_nf), minval=-k_in1, maxval=k_in1,
                            dtype=jnp.float32)
    b1 = jax.random.uniform(kb1, (hidden_nf,), minval=-k_in1, maxval=k_in1,
                            dtype=jnp.float32)
    bound2 = 1e-3 * math.sqrt(6.0 / (hidden_nf + 1))
    w2 = jax.random.uniform(k2, (hidden_nf, 1), minval=-bound2, maxval=bound2,
                            dtype=jnp.float32)
    params = (w0, b0, w1, b1, w2)

    # ---- check 1: 'sum' aggregation, single edge tile ------------------------
    out = jax.block_until_ready(equivariant_update(
        h, coord, row, col, coord_diff, edge_attr, edge_mask, node_mask, params,
        tanh=tanh, coords_range=coords_range,
        normalization_factor=normalization_factor, aggregation_method='sum'))
    ref = jax.block_until_ready(reference(
        h, coord, row, col, coord_diff, edge_attr, edge_mask, node_mask, params,
        tanh=tanh, coords_range=coords_range,
        normalization_factor=normalization_factor, aggregation_method='sum'))
    assert out.shape == coord.shape
    assert bool(jnp.allclose(out, ref, atol=1e-4, rtol=1e-4)), "mismatch (sum)"

    # ---- check 2: 'mean' aggregation, forced multi-tile grid (with padding) --
    out_m = jax.block_until_ready(equivariant_update(
        h, coord, row, col, coord_diff, edge_attr, edge_mask, node_mask, params,
        tanh=tanh, coords_range=coords_range,
        normalization_factor=normalization_factor, aggregation_method='mean',
        e_tile=32))
    ref_m = jax.block_until_ready(reference(
        h, coord, row, col, coord_diff, edge_attr, edge_mask, node_mask, params,
        tanh=tanh, coords_range=coords_range,
        normalization_factor=normalization_factor, aggregation_method='mean'))
    assert bool(jnp.allclose(out_m, ref_m, atol=1e-4, rtol=1e-4)), "mismatch (mean)"

    print("KERNEL_OK")
</pallas_src>

<mosaic_0001>
module attributes {stable_mosaic.version = 11 : i64} {
  func.func @equivariant_update_kernel(%arg0: i32, %arg1: memref<56x2xi32, #tpu.memory_space<vmem>>, %arg2: memref<56x3xf32, #tpu.memory_space<vmem>>, %arg3: memref<56x1xf32, #tpu.memory_space<vmem>>, %arg4: memref<56x1xf32, #tpu.memory_space<vmem>>, %arg5: memref<8x32xf32, #tpu.memory_space<vmem>>, %arg6: memref<8x3xf32, #tpu.memory_space<vmem>>, %arg7: memref<8x1xf32, #tpu.memory_space<vmem>>, %arg8: memref<32x64xf32, #tpu.memory_space<vmem>>, %arg9: memref<1x32xf32, #tpu.memory_space<vmem>>, %arg10: memref<2x32xf32, #tpu.memory_space<vmem>>, %arg11: memref<32x32xf32, #tpu.memory_space<vmem>>, %arg12: memref<1x32xf32, #tpu.memory_space<vmem>>, %arg13: memref<8x3xf32, #tpu.memory_space<vmem>>, %arg14: memref<16x32xbf16, #tpu.memory_space<vmem>>, %arg15: memref<8x3xf32, #tpu.memory_space<vmem>>, %arg16: memref<8x1xf32, #tpu.memory_space<vmem>>) attributes {dimension_semantics = [#tpu.dimension_semantics<arbitrary>], iteration_bounds = array<i64: 1>, scalar_prefetch = 0 : i64, scratch_operands = 3 : i64, tpu.core_type = #tpu.core_type<tc>, window_params = [{transform_indices = @transform_0, window_bounds = array<i64: 56, 2>}, {transform_indices = @transform_1, window_bounds = array<i64: 56, 3>}, {transform_indices = @transform_2, window_bounds = array<i64: 56, 1>}, {transform_indices = @transform_3, window_bounds = array<i64: 56, 1>}, {pipeline_mode = #tpu.pipeline_mode<synchronous>, transform_indices = @transform_4, window_bounds = array<i64: 8, 32>}, {pipeline_mode = #tpu.pipeline_mode<synchronous>, transform_indices = @transform_5, window_bounds = array<i64: 8, 3>}, {pipeline_mode = #tpu.pipeline_mode<synchronous>, transform_indices = @transform_6, window_bounds = array<i64: 8, 1>}, {pipeline_mode = #tpu.pipeline_mode<synchronous>, transform_indices = @transform_7, window_bounds = array<i64: 32, 64>}, {pipeline_mode = #tpu.pipeline_mode<synchronous>, transform_indices = @transform_8, window_bounds = array<i64: 1, 32>}, {pipeline_mode = #tpu.pipeline_mode<synchronous>, transform_indices = @transform_9, window_bounds = array<i64: 2, 32>}, {pipeline_mode = #tpu.pipeline_mode<synchronous>, transform_indices = @transform_10, window_bounds = array<i64: 32, 32>}, {pipeline_mode = #tpu.pipeline_mode<synchronous>, transform_indices = @transform_11, window_bounds = array<i64: 1, 32>}, {pipeline_mode = #tpu.pipeline_mode<synchronous>, transform_indices = @transform_12, window_bounds = array<i64: 8, 3>}]} {
    %c0_i32 = arith.constant 0 : i32
    %0 = arith.cmpi eq, %arg0, %c0_i32 : i32
    %1 = arith.extui %0 : i1 to i32
    %c0_i32_0 = arith.constant 0 : i32
    %2 = arith.cmpi ne, %1, %c0_i32_0 : i32
    scf.if %2 {
      %c0_31 = arith.constant 0 : index
      %c0_32 = arith.constant 0 : index
      %70 = vector.load %arg5[%c0_31, %c0_32] : memref<8x32xf32, #tpu.memory_space<vmem>>, vector<8x32xf32>
      %c0_33 = arith.constant 0 : index
      %c0_34 = arith.constant 0 : index
      %71 = vector.load %arg8[%c0_33, %c0_34] : memref<32x64xf32, #tpu.memory_space<vmem>>, vector<32x64xf32>
      %cst_35 = arith.constant dense<0.000000e+00> : vector<8x64xf32>
      %72 = tpu.matmul %70, %71, %cst_35 {dimension_numbers = #tpu.dot_dimension_numbers<[1], [0], [0], [1], [0, 0, 1, 1], [], []>} : vector<8x32xf32>, vector<32x64xf32>, vector<8x64xf32> -> vector<8x64xf32>
      %73 = vector.extract_strided_slice %72 {offsets = [0, 0], sizes = [8, 32], strides = [1, 1]} : vector<8x64xf32> to vector<8x32xf32>
      %74 = arith.truncf %73 : vector<8x32xf32> to vector<8x32xbf16>
      %c0_36 = arith.constant 0 : index
      %c0_37 = arith.constant 0 : index
      %75 = vector.load %arg14[%c0_36, %c0_37] : memref<16x32xbf16, #tpu.memory_space<vmem>>, vector<8x32xbf16>
      tpu.vector_store %arg14[%c0_36, %c0_37], %74 {strides = array<i32>} : memref<16x32xbf16, #tpu.memory_space<vmem>>, vector<8x32xbf16>,
      %76 = vector.extract_strided_slice %72 {offsets = [0, 32], sizes = [8, 32], strides = [1, 1]} : vector<8x64xf32> to vector<8x32xf32>
      %77 = arith.truncf %76 : vector<8x32xf32> to vector<8x32xbf16>
      %c8 = arith.constant 8 : index
      %c0_38 = arith.constant 0 : index
      %78 = vector.load %arg14[%c8, %c0_38] : memref<16x32xbf16, #tpu.memory_space<vmem>>, vector<8x32xbf16>
      tpu.vector_store %arg14[%c8, %c0_38], %77 {strides = array<i32>} : memref<16x32xbf16, #tpu.memory_space<vmem>>, vector<8x32xbf16>,
      %cst_39 = arith.constant 0.000000e+00 : f32
      %79 = vector.broadcast %cst_39 : f32 to vector<8x3xf32>
      %c0_40 = arith.constant 0 : index
      %c0_41 = arith.constant 0 : index
      %80 = vector.load %arg15[%c0_40, %c0_41] : memref<8x3xf32, #tpu.memory_space<vmem>>, vector<8x3xf32>
      tpu.vector_store %arg15[%c0_40, %c0_41], %79 {strides = array<i32>} : memref<8x3xf32, #tpu.memory_space<vmem>>, vector<8x3xf32>,
      %cst_42 = arith.constant 0.000000e+00 : f32
      %81 = vector.broadcast %cst_42 : f32 to vector<8x1xf32>
      %c0_43 = arith.constant 0 : index
      %c0_44 = arith.constant 0 : index
      %82 = vector.load %arg16[%c0_43, %c0_44] : memref<8x1xf32, #tpu.memory_space<vmem>>, vector<8x1xf32>
      tpu.vector_store %arg16[%c0_43, %c0_44], %81 {strides = array<i32>} : memref<8x1xf32, #tpu.memory_space<vmem>>, vector<8x1xf32>,
    } else {
    }
    %c0 = arith.constant 0 : index
    %c0_1 = arith.constant 0 : index
    %3 = vector.load %arg1[%c0, %c0_1] : memref<56x2xi32, #tpu.memory_space<vmem>>, vector<56x2xi32>
    %4 = tpu.iota {dimensions = array<i32: 1>} : vector<56x8xi32>
    %5 = vector.extract_strided_slice %3 {offsets = [0, 0], sizes = [56, 1], strides = [1, 1]} : vector<56x2xi32> to vector<56x1xi32>
    %6 = vector.broadcast %5 : vector<56x1xi32> to vector<56x8xi32>
    %7 = arith.cmpi eq, %6, %4 : vector<56x8xi32>
    %8 = arith.extui %7 : vector<56x8xi1> to vector<56x8xi32>
    %9 = arith.sitofp %8 : vector<56x8xi32> to vector<56x8xf32>
    %10 = arith.truncf %9 : vector<56x8xf32> to vector<56x8xbf16>
    %11 = vector.extract_strided_slice %3 {offsets = [0, 1], sizes = [56, 1], strides = [1, 1]} : vector<56x2xi32> to vector<56x1xi32>
    %12 = vector.broadcast %11 : vector<56x1xi32> to vector<56x8xi32>
    %13 = arith.cmpi eq, %12, %4 : vector<56x8xi32>
    %14 = arith.extui %13 : vector<56x8xi1> to vector<56x8xi32>
    %15 = arith.sitofp %14 : vector<56x8xi32> to vector<56x8xf32>
    %16 = arith.truncf %15 : vector<56x8xf32> to vector<56x8xbf16>
    %17 = tpu.concatenate %10, %16 in 1 : vector<56x8xbf16>, vector<56x8xbf16> -> vector<56x16xbf16>
    %c0_2 = arith.constant 0 : index
    %c0_3 = arith.constant 0 : index
    %18 = vector.load %arg14[%c0_2, %c0_3] : memref<16x32xbf16, #tpu.memory_space<vmem>>, vector<16x32xbf16>
    %cst = arith.constant dense<0.000000e+00> : vector<56x32xf32>
    %19 = tpu.matmul %17, %18, %cst {dimension_numbers = #tpu.dot_dimension_numbers<[1], [0], [0], [1], [0, 0, 1, 1], [], []>} : vector<56x16xbf16>, vector<16x32xbf16>, vector<56x32xf32> -> vector<56x32xf32>
    %c0_4 = arith.constant 0 : index
    %c0_5 = arith.constant 0 : index
    %20 = vector.load %arg3[%c0_4, %c0_5] : memref<56x1xf32, #tpu.memory_space<vmem>>, vector<56x1xf32>
    %c0_6 = arith.constant 0 : index
    %c0_7 = arith.constant 0 : index
    %21 = vector.load %arg9[%c0_6, %c0_7] : memref<1x32xf32, #tpu.memory_space<vmem>>, vector<1x32xf32>
    %22 = vector.broadcast %20 : vector<56x1xf32> to vector<56x32xf32>
    %23 = vector.broadcast %21 : vector<1x32xf32> to vector<56x32xf32>
    %24 = arith.mulf %22, %23 : vector<56x32xf32>
    %25 = arith.addf %19, %24 : vector<56x32xf32>
    %c0_8 = arith.constant 0 : index
    %c0_9 = arith.constant 0 : index
    %26 = vector.load %arg10[%c0_8, %c0_9] : memref<2x32xf32, #tpu.memory_space<vmem>>, vector<1x32xf32>
    %27 = vector.broadcast %26 : vector<1x32xf32> to vector<56x32xf32>
    %28 = arith.addf %25, %27 : vector<56x32xf32>
    %29 = arith.negf %28 : vector<56x32xf32>
    %30 = math.exp %29 : vector<56x32xf32>
    %cst_10 = arith.constant 1.000000e+00 : f32
    %31 = vector.broadcast %cst_10 : f32 to vector<56x32xf32>
    %32 = arith.addf %31, %30 : vector<56x32xf32>
    %33 = arith.divf %31, %32 : vector<56x32xf32>
    %34 = arith.mulf %28, %33 : vector<56x32xf32>
    %35 = arith.truncf %34 : vector<56x32xf32> to vector<56x32xbf16>
    %c0_11 = arith.constant 0 : index
    %c0_12 = arith.constant 0 : index
    %36 = vector.load %arg11[%c0_11, %c0_12] : memref<32x32xf32, #tpu.memory_space<vmem>>, vector<32x32xf32>
    %37 = arith.truncf %36 : vector<32x32xf32> to vector<32x32xbf16>
    %cst_13 = arith.constant dense<0.000000e+00> : vector<56x32xf32>
    %38 = tpu.matmul %35, %37, %cst_13 {dimension_numbers = #tpu.dot_dimension_numbers<[1], [0], [0], [1], [0, 0, 1, 1], [], []>} : vector<56x32xbf16>, vector<32x32xbf16>, vector<56x32xf32> -> vector<56x32xf32>
    %c1 = arith.constant 1 : index
    %c0_14 = arith.constant 0 : index
    %39 = vector.load %arg10[%c1, %c0_14] : memref<2x32xf32, #tpu.memory_space<vmem>>, vector<1x32xf32>
    %40 = vector.broadcast %39 : vector<1x32xf32> to vector<56x32xf32>
    %41 = arith.addf %38, %40 : vector<56x32xf32>
    %42 = arith.negf %41 : vector<56x32xf32>
    %43 = math.exp %42 : vector<56x32xf32>
    %cst_15 = arith.constant 1.000000e+00 : f32
    %44 = vector.broadcast %cst_15 : f32 to vector<56x32xf32>
    %45 = arith.addf %44, %43 : vector<56x32xf32>
    %46 = arith.divf %44, %45 : vector<56x32xf32>
    %47 = arith.mulf %41, %46 : vector<56x32xf32>
    %c0_16 = arith.constant 0 : index
    %c0_17 = arith.constant 0 : index
    %48 = vector.load %arg12[%c0_16, %c0_17] : memref<1x32xf32, #tpu.memory_space<vmem>>, vector<1x32xf32>
    %49 = vector.broadcast %48 : vector<1x32xf32> to vector<56x32xf32>
    %50 = arith.mulf %47, %49 : vector<56x32xf32>
    %cst_18 = arith.constant dense<0.000000e+00> : vector<56xf32>
    %51 = vector.multi_reduction <add>, %50, %cst_18 [1] : vector<56x32xf32> to vector<56xf32>
    %52 = vector.shape_cast %51 : vector<56xf32> to vector<56x1xf32>
    %53 = math.tanh %52 : vector<56x1xf32>
    %cst_19 = arith.constant 1.000000e+01 : f32
    %54 = vector.broadcast %cst_19 : f32 to vector<56x1xf32>
    %55 = arith.mulf %53, %54 : vector<56x1xf32>
    %c0_20 = arith.constant 0 : index
    %c0_21 = arith.constant 0 : index
    %56 = vector.load %arg2[%c0_20, %c0_21] : memref<56x3xf32, #tpu.memory_space<vmem>>, vector<56x3xf32>
    %57 = vector.broadcast %55 : vector<56x1xf32> to vector<56x3xf32>
    %58 = arith.mulf %56, %57 : vector<56x3xf32>
    %c0_22 = arith.constant 0 : index
    %c0_23 = arith.constant 0 : index
    %59 = vector.load %arg4[%c0_22, %c0_23] : memref<56x1xf32, #tpu.memory_space<vmem>>, vector<56x1xf32>
    %60 = vector.broadcast %59 : vector<56x1xf32> to vector<56x3xf32>
    %61 = arith.mulf %58, %60 : vector<56x3xf32>
    %c0_24 = arith.constant 0 : index
    %c0_25 = arith.constant 0 : index
    %62 = vector.load %arg15[%c0_24, %c0_25] : memref<8x3xf32, #tpu.memory_space<vmem>>, vector<8x3xf32>
    %63 = arith.truncf %61 : vector<56x3xf32> to vector<56x3xbf16>
    %cst_26 = arith.constant dense<0.000000e+00> : vector<8x3xf32>
    %64 = tpu.matmul %10, %63, %cst_26 {dimension_numbers = #tpu.dot_dimension_numbers<[0], [0], [1], [1], [0, 1, 1, 1], [], []>} : vector<56x8xbf16>, vector<56x3xbf16>, vector<8x3xf32> -> vector<8x3xf32>
    %65 = arith.addf %62, %64 : vector<8x3xf32>
    %c0_27 = arith.constant 0 : index
    %c0_28 = arith.constant 0 : index
    %66 = vector.load %arg15[%c0_27, %c0_28] : memref<8x3xf32, #tpu.memory_space<vmem>>, vector<8x3xf32>
    tpu.vector_store %arg15[%c0_27, %c0_28], %65 {strides = array<i32>} : memref<8x3xf32, #tpu.memory_space<vmem>>, vector<8x3xf32>,
    %c0_i32_29 = arith.constant 0 : i32
    %67 = arith.cmpi eq, %arg0, %c0_i32_29 : i32
    %68 = arith.extui %67 : i1 to i32
    %c0_i32_30 = arith.constant 0 : i32
    %69 = arith.cmpi ne, %68, %c0_i32_30 : i32
    scf.if %69 {
      %c0_31 = arith.constant 0 : index
      %c0_32 = arith.constant 0 : index
      %70 = vector.load %arg15[%c0_31, %c0_32] : memref<8x3xf32, #tpu.memory_space<vmem>>, vector<8x3xf32>
      %cst_33 = arith.constant 1.000000e+02 : f32
      %71 = vector.broadcast %cst_33 : f32 to vector<8x3xf32>
      %72 = arith.divf %70, %71 : vector<8x3xf32>
      %c0_34 = arith.constant 0 : index
      %c0_35 = arith.constant 0 : index
      %73 = vector.load %arg6[%c0_34, %c0_35] : memref<8x3xf32, #tpu.memory_space<vmem>>, vector<8x3xf32>
      %74 = arith.addf %73, %72 : vector<8x3xf32>
      %c0_36 = arith.constant 0 : index
      %c0_37 = arith.constant 0 : index
      %75 = vector.load %arg7[%c0_36, %c0_37] : memref<8x1xf32, #tpu.memory_space<vmem>>, vector<8x1xf32>
      %76 = vector.broadcast %75 : vector<8x1xf32> to vector<8x3xf32>
      %77 = arith.mulf %74, %76 : vector<8x3xf32>
      %c0_38 = arith.constant 0 : index
      %c0_39 = arith.constant 0 : index
      %78 = vector.load %arg13[%c0_38, %c0_39] : memref<8x3xf32, #tpu.memory_space<vmem>>, vector<8x3xf32>
      tpu.vector_store %arg13[%c0_38, %c0_39], %77 {strides = array<i32>} : memref<8x3xf32, #tpu.memory_space<vmem>>, vector<8x3xf32>,
    } else {
    }
    return
  }
  func.func @transform_0(%arg0: i32) -> (i32, i32) {
    %c0_i32 = arith.constant 0 : i32
    %c0_i32_0 = arith.constant 0 : i32
    return %arg0, %c0_i32 : i32, i32
  }
  func.func @transform_1(%arg0: i32) -> (i32, i32) {
    %c0_i32 = arith.constant 0 : i32
    %c0_i32_0 = arith.constant 0 : i32
    return %arg0, %c0_i32 : i32, i32
  }
  func.func @transform_2(%arg0: i32) -> (i32, i32) {
    %c0_i32 = arith.constant 0 : i32
    %c0_i32_0 = arith.constant 0 : i32
    return %arg0, %c0_i32 : i32, i32
  }
  func.func @transform_3(%arg0: i32) -> (i32, i32) {
    %c0_i32 = arith.constant 0 : i32
    %c0_i32_0 = arith.constant 0 : i32
    return %arg0, %c0_i32 : i32, i32
  }
  func.func @transform_4(%arg0: i32) -> (i32, i32) {
    %c0_i32 = arith.constant 0 : i32
    %c0_i32_0 = arith.constant 0 : i32
    %c0_i32_1 = arith.constant 0 : i32
    return %c0_i32, %c0_i32_0 : i32, i32
  }
  func.func @transform_5(%arg0: i32) -> (i32, i32) {
    %c0_i32 = arith.constant 0 : i32
    %c0_i32_0 = arith.constant 0 : i32
    %c0_i32_1 = arith.constant 0 : i32
    return %c0_i32, %c0_i32_0 : i32, i32
  }
  func.func @transform_6(%arg0: i32) -> (i32, i32) {
    %c0_i32 = arith.constant 0 : i32
    %c0_i32_0 = arith.constant 0 : i32
    %c0_i32_1 = arith.constant 0 : i32
    return %c0_i32, %c0_i32_0 : i32, i32
  }
  func.func @transform_7(%arg0: i32) -> (i32, i32) {
    %c0_i32 = arith.constant 0 : i32
    %c0_i32_0 = arith.constant 0 : i32
    %c0_i32_1 = arith.constant 0 : i32
    return %c0_i32, %c0_i32_0 : i32, i32
  }
  func.func @transform_8(%arg0: i32) -> (i32, i32) {
    %c0_i32 = arith.constant 0 : i32
    %c0_i32_0 = arith.constant 0 : i32
    %c0_i32_1 = arith.constant 0 : i32
    return %c0_i32, %c0_i32_0 : i32, i32
  }
  func.func @transform_9(%arg0: i32) -> (i32, i32) {
    %c0_i32 = arith.constant 0 : i32
    %c0_i32_0 = arith.constant 0 : i32
    %c0_i32_1 = arith.constant 0 : i32
    return %c0_i32, %c0_i32_0 : i32, i32
  }
  func.func @transform_10(%arg0: i32) -> (i32, i32) {
    %c0_i32 = arith.constant 0 : i32
    %c0_i32_0 = arith.constant 0 : i32
    %c0_i32_1 = arith.constant 0 : i32
    return %c0_i32, %c0_i32_0 : i32, i32
  }
  func.func @transform_11(%arg0: i32) -> (i32, i32) {
    %c0_i32 = arith.constant 0 : i32
    %c0_i32_0 = arith.constant 0 : i32
    %c0_i32_1 = arith.constant 0 : i32
    return %c0_i32, %c0_i32_0 : i32, i32
  }
  func.func @transform_12(%arg0: i32) -> (i32, i32) {
    %c0_i32 = arith.constant 0 : i32
    %c0_i32_0 = arith.constant 0 : i32
    %c0_i32_1 = arith.constant 0 : i32
    return %c0_i32, %c0_i32_0 : i32, i32
  }
}

</mosaic_0001>

<bundles_post_ra>
// kernel: tpu_custom_call.1
= control target key start
LH: loop header
LB: loop body
LE: loop exit
PB: predicated region body
PF: predicated region fallthrough
CT: control target
= control target key end

     0   :  { %v996_v0 = vmov 0.0|0.0   ;;  %vm997_vm0 = vmmov 0   ;;  %v998_v4 = vmov 0.0   ;;  %v999_v7 = vmov 1   ;;  %s1002_s18 = smov 96   ;;  %s1282_s7 = inlined_call_operand.vmem [shape: f32[32,64], index: 7, kind: input, shape index: {}]   ;;  %s1283_s0 = inlined_call_operand.vmem [shape: s32[56,2], index: 0, kind: input, shape index: {}]   ;;  %s1284_s4 = inlined_call_operand.vmem [shape: f32[8,32], index: 4, kind: input, shape index: {}]   ;;  %s1285_s2 = inlined_call_operand.vmem [shape: f32[56,1], index: 2, kind: input, shape index: {}]   ;;  %s1286_s3 = inlined_call_operand.vmem [shape: f32[56,1], index: 3, kind: input, shape index: {}]   ;;  %s1287_s10 = inlined_call_operand.vmem [shape: f32[32,32], index: 10, kind: input, shape index: {}]   ;;  %s1288_s8 = inlined_call_operand.vmem [shape: f32[1,32], index: 8, kind: input, shape index: {}]   ;;  %s1289_s9 = inlined_call_operand.vmem [shape: f32[2,32], index: 9, kind: input, shape index: {}]   ;;  %s1290_s11 = inlined_call_operand.vmem [shape: f32[1,32], index: 11, kind: input, shape index: {}]   ;;  %s1291_s6 = inlined_call_operand.vmem [shape: f32[8,1], index: 6, kind: input, shape index: {}]   ;;  %s1292_s1 = inlined_call_operand.vmem [shape: f32[56,3], index: 1, kind: input, shape index: {}]   ;;  %s1293_s5 = inlined_call_operand.vmem [shape: f32[8,3], index: 5, kind: input, shape index: {}]   ;;  %s1294_s12 = inlined_call_operand.vmem [shape: f32[8,3], index: 12, kind: output, shape index: {}]  }
   0x1   :  { %909 = vmatprep.subr.bf16.mxu0 %v996_v0  ;;  %v47_v1 = vld [vmem:[%s1282_s7] sm:$0xff]  ;;  %v48_v2 = vld [vmem:[%s1282_s7 + $0x8] sm:$0xff]  ;;  %v49_v3 = vld [vmem:[%s1282_s7 + $0x10] sm:$0xff]  ;;  %872 = vmatprep.mubr.msk.f32.mxu0 %vm997_vm0, %v998_v4  ;;  %vm51_vm1 = vcmask 261120   ;;  %v1000_v17 = vmov 0   ;;  %v146_v18 = vlaneseq  ;;  %vm126_vm8 = vcmask 257024  }
   0x2   :  { %v910_v5 = vpack.c.bf16 %v48_v2, %v47_v1  ;;  %v50_v6 = vld [vmem:[%s1282_s7 + $0x18] sm:$0xff]  ;;  %923 = vset.pattern.permute.xlu1 %v999_v7  ;;  %922 = vset.pattern.permute.xlu0 %v999_v7  ;;  %v141_v8 = vld [vmem:[%s1283_s0 + $0x10] sm:$0xff]  ;;  %v139_v9 = vld [vmem:[%s1283_s0] sm:$0xff]  ;;  %vm252_vm12 = vcmask 64512   ;;  %vm322_vm13 = vcmask 130048   ;;  %vm133_vm14 = vcmask 261124  }
   0x3   :  { %201 = vperm.xlu1 %923, %v141_v8   ;;  %v913_v10 = vpack.c.bf16 %v50_v6, %v49_v3  ;;  %195 = vperm.xlu0 %922, %v139_v9   ;;  %v142_v11 = vld [vmem:[%s1283_s0 + $0x18] sm:$0xff]  ;;  %v140_v12 = vld [vmem:[%s1283_s0 + $0x8] sm:$0xff]  ;;  %v46_v13 = vld [vmem:[%s1284_s4] sm:$0xff]  ;;  %v1107_v19 = vand.u32 127, %v146_v18 }
   0x4   :  { %911 = vmatpush3.bf16.msra.mxu0 %v910_v5  ;;  %v144_v14 = vld [vmem:[%s1283_s0 + $0x28] sm:$0xff]  ;;  %v143_v15 = vld [vmem:[%s1283_s0 + $0x20] sm:$0xff]  ;;  %v145_v16 = vld [vmem:[%s1283_s0 + $0x30] sm:$0xff]  ;;  %s1001_s0 = smov 8  }
   0x5   :  { %912 = vmatprep.subr.bf16.mxu0 %v996_v0  ;;  %v266_v35 = vld [vmem:[%s1285_s2] sm:$0xff]  ;;  %v268_v36 = vld [vmem:[%s1285_s2 + $0x10] sm:$0xff]  ;;  %v661_v39 = vld [vmem:[%s1286_s3 + $0x8] sm:$0xff] }
   0x6   :  { %v270_v37 = vld [vmem:[%s1285_s2 + $0x20] sm:$0xff]  ;;  %v272_v38 = vld [vmem:[%s1285_s2 + $0x30] sm:$0xff]  ;;  %v267_v50 = vld [vmem:[%s1285_s2 + $0x8] sm:$0xff] }
   0x7   :  { %204 = vperm.xlu1 %923, %v142_v11   ;;  %198 = vperm.xlu0 %922, %v140_v12   ;;  %v664_v40 = vld [vmem:[%s1286_s3 + $0x20] sm:$0xff]  ;;  %v269_v52 = vld [vmem:[%s1285_s2 + $0x18] sm:$0xff]  ;;  %v271_v57 = vld [vmem:[%s1285_s2 + $0x28] sm:$0xff] }
   0x8   :  { %914 = vmatpush3.bf16.msra.mxu0 %v913_v10  ;;  %v660_v60 = vld [vmem:[%s1286_s3] sm:$0xff]  ;;  %v662_v61 = vld [vmem:[%s1286_s3 + $0x10] sm:$0xff]  ;;  %v663_v62 = vld [vmem:[%s1286_s3 + $0x18] sm:$0xff] }
   0xb   :  { %873 = vmatmul.mubr.msk.f32.vlgmr.msra.gmra.mrb[0].mxu0 %vm51_vm1, %v46_v13  ;;  %210 = vperm.xlu1 %923, %v144_v14  }
   0xc   :  { %207 = vperm.xlu0 %922, %v143_v15  }
   0xf   :  { %924 = vset.pattern.permute.xlu1 %v1000_v17 }
  0x10   :  { %213 = vperm.xlu0 %922, %v145_v16   ;;  %149 = vperm.xlu1 %924, %v139_v9  }
  0x14   :  { %925 = vset.pattern.permute.xlu0 %v1000_v17  ;;  %155 = vperm.xlu1 %924, %v141_v8  }
  0x15   :  { %152 = vperm.xlu0 %925, %v140_v12  }
  0x19   :  { %158 = vperm.xlu0 %925, %v142_v11  }
  0x1d   :  { %164 = vperm.xlu0 %925, %v144_v14  }
  0x82   :  { %v202_v20 = vpop.permute.xlu1 %201  ;;  %v196_v21 = vpop.permute.xlu0 %195 }
  0x83   :  { %vm217_vm2 = vcmp.eq.s32.totalorder %v202_v20, %v1107_v19  ;;  %vm215_vm3 = vcmp.eq.s32.totalorder %v196_v21, %v1107_v19  ;;  %v461_v20 = vld [vmem:[%s1287_s10 + $0x8] sm:$0xff] }
  0x84   :  { %v811_v22 = vsel %vm217_vm2, 1.0, %v998_v4  ;;  %v809_v24 = vsel %vm215_vm3, 1.0, %v998_v4 }
  0x86   :  { %v205_v23 = vpop.permute.xlu1 %204  ;;  %v199_v25 = vpop.permute.xlu0 %198 }
  0x87   :  { %vm218_vm4 = vcmp.eq.s32.totalorder %v205_v23, %v1107_v19  ;;  %vm216_vm5 = vcmp.eq.s32.totalorder %v199_v25, %v1107_v19  ;;  %v463_v23 = vld [vmem:[%s1287_s10 + $0x18] sm:$0xff] }
  0x88   :  { %v812_v26 = vsel %vm218_vm4, 1.0, %v998_v4  ;;  %v810_v28 = vsel %vm216_vm5, 1.0, %v998_v4 }
  0x89   :  { %v237_v27 = vpack.c.bf16 %v812_v26, %v811_v22  ;;  %v236_v29 = vpack.c.bf16 %v810_v28, %v809_v24  ;;  %v462_v22 = vld [vmem:[%s1287_s10 + $0x10] sm:$0xff]  ;;  %v816_v28 = vld [vmem:[%s1288_s8] ss:$0 sm:$0xff] }
  0x8a   :  { %v211_v30 = vpop.permute.xlu1 %210  ;;  %v465_v24 = vpack.c.bf16 %v463_v23, %v462_v22 }
  0x8b   :  { %vm220_vm6 = vcmp.eq.s32.totalorder %v211_v30, %v1107_v19  ;;  %v208_v31 = vpop.permute.xlu0 %207  ;;  %244 = vrot.lane.b32.xlu0 %v236_v29, %s1001_s0 }
  0x8c   :  { %v814_v32 = vsel %vm220_vm6, 1.0, %v998_v4  ;;  %vm219_vm7 = vcmp.eq.s32.totalorder %v208_v31, %v1107_v19  ;;  %vm730_vm6 = vcmask 457728  }
  0x8d   :  { %v813_v33 = vsel %vm219_vm7, 1.0, %v998_v4 }
  0x8e   :  { %v238_v34 = vpack.c.bf16 %v814_v32, %v813_v33 }
  0x8f   :  { %v214_v45 = vpop.permute.xlu0 %213  ;;  %v150_v51 = vpop.permute.xlu1 %149 }
  0x90   :  { %248 = vrot.lane.b32.xlu0 %v238_v34, %s1001_s0  ;;  %vm221_vm9 = vcmp.eq.s32.totalorder %v214_v45, %v1107_v19  ;;  %vm169_vm11 = vcmp.eq.s32.totalorder %v150_v51, %v1107_v19  ;;  %v821_v34 = vld [vmem:[%s1289_s9] ss:$0 sm:$0xff] }
  0x91   :  { %v815_v46 = vsel %vm221_vm9, 1.0, %v998_v4  ;;  %v802_v55 = vsel %vm169_vm11, 1.0, %v998_v4 }
  0x92   :  { %v239_v48 = vpack.c.bf16 %v815_v46, %v815_v46 }
  0x93   :  { %v156_v63 = vpop.permute.xlu1 %155 }
  0x94   :  { %276 = vperm.xlu0 %925, %v266_v35   ;;  %v153_v47 = vpop.permute.xlu0 %152  ;;  %vm171_vm2 = vcmp.eq.s32.totalorder %v156_v63, %v1107_v19 }
  0x95   :  { %vm170_vm10 = vcmp.eq.s32.totalorder %v153_v47, %v1107_v19  ;;  %v804_v6 = vsel %vm171_vm2, 1.0, %v998_v4 }
  0x96   :  { %v803_v53 = vsel %vm170_vm10, 1.0, %v998_v4 }
  0x97   :  { %v1155_v56 = vpack.c.bf16 %v803_v53, %v802_v55 }
  0x98   :  { %286 = vperm.xlu0 %925, %v268_v36   ;;  %v159_v49 = vpop.permute.xlu0 %158 }
  0x99   :  { %vm172_vm15 = vcmp.eq.s32.totalorder %v159_v49, %v1107_v19 }
  0x9a   :  { %v805_v5 = vsel %vm172_vm15, 1.0, %v998_v4 }
  0x9b   :  { %v1183_v10 = vpack.c.bf16 %v805_v5, %v804_v6 }
  0x9c   :  { %296 = vperm.xlu0 %925, %v270_v37   ;;  %v165_v54 = vpop.permute.xlu0 %164 }
  0x9d   :  { %vm174_vm4 = vcmp.eq.s32.totalorder %v165_v54, %v1107_v19 }
  0x9e   :  { %v807_v8 = vsel %vm174_vm4, 1.0, %v998_v4 }
  0xa0   :  { %306 = vperm.xlu0 %925, %v272_v38  }
  0xa4   :  { %674 = vperm.xlu0 %925, %v661_v39  }
  0xa8   :  { %689 = vperm.xlu0 %925, %v664_v40  }
  0xde   :  { %v121_v41 = vpop.f32.mrb[0].mxu0 }
  0xdf   :  { %v125_v42 = vpack.c.bf16 %v121_v41, %v121_v41  ;;  %v874_v43 = vpop.f32.mrb[1].mxu0 }
  0xe1   :  { %127 = vst.msk [vmem:[#allocation2] sm:$0xf] %vm126_vm8, %v125_v42  ;;  %v129_v44 = vrot.slane %v125_v42, 4 }
  0xe3   :  { %130 = vrot.lane.b32.xlu1 %v129_v44, %s1002_s18 }
  0xe7   :  { %161 = vperm.xlu1 %924, %v143_v15  }
  0xeb   :  { %167 = vperm.xlu1 %924, %v145_v16  }
  0xef   :  { %246 = vrot.lane.b32.xlu1 %v237_v27, %s1001_s0 }
  0xf3   :  { %250 = vrot.lane.b32.xlu1 %v239_v48, %s1001_s0 }
  0xf7   :  { %281 = vperm.xlu1 %924, %v267_v50  }
  0xfb   :  { %291 = vperm.xlu1 %924, %v269_v52  }
  0xfd   :  { %v245_v58 = vpop.permute.xlu0 %244 }
  0xfe   :  { %v255_v59 = vsel %vm252_vm12, %v1155_v56, %v245_v58 }
  0xff   :  { %301 = vperm.xlu1 %924, %v271_v57   ;;  %877 = vmatprep.mubr.msk.bf16.mxu1 %vm322_vm13, %v255_v59 }
 0x102   :  { %v249_v12 = vpop.permute.xlu0 %248 }
 0x103   :  { %669 = vperm.xlu1 %924, %v660_v60  }
 0x107   :  { %679 = vperm.xlu1 %924, %v662_v61  }
 0x10b   :  { %684 = vperm.xlu1 %924, %v663_v62  }
 0x113   :  { %v277_v25 = vpop.permute.xlu0 %276 }
 0x114   :  { %v315_v31 = vmul.f32 %v816_v28, %v277_v25 }
 0x117   :  { %v287_v27 = vpop.permute.xlu0 %286 }
 0x118   :  { %v317_v30 = vmul.f32 %v816_v28, %v287_v27 }
 0x11b   :  { %v297_v32 = vpop.permute.xlu0 %296 }
 0x11c   :  { %v319_v54 = vmul.f32 %v816_v28, %v297_v32 }
 0x11f   :  { %v307_v48 = vpop.permute.xlu0 %306 }
 0x120   :  { %v321_v51 = vmul.f32 %v816_v28, %v307_v48 }
 0x155   :  { %v131_v0 = vpop.permute.xlu1 %130 }
 0x156   :  { %134 = vst.msk [vmem:[#allocation2] sm:$0xf0] %vm133_vm14, %v131_v0 }
 0x15d   :  { %v265_v1 = vld [vmem:[#allocation2] sm:$0xff] }
 0x15e   :  { %875 = vmatprep.subr.bf16.mxu1 %v265_v1 }
 0x15f   :  { %876 = vmatpush3.bf16.msra.mxu1 %v265_v1 }
 0x160   :  { %897 = vmatprep.subr.bf16.mxu1 %v998_v4 }
 0x166   :  { %v162_v2 = vpop.permute.xlu1 %161 }
 0x167   :  { %vm173_vm3 = vcmp.eq.s32.totalorder %v162_v2, %v1107_v19 }
 0x168   :  { %v806_v3 = vsel %vm173_vm3, 1.0, %v998_v4 }
 0x169   :  { %v1181_v9 = vpack.c.bf16 %v807_v8, %v806_v3 }
 0x16a   :  { %v168_v7 = vpop.permute.xlu1 %167 }
 0x16b   :  { %vm175_vm5 = vcmp.eq.s32.totalorder %v168_v7, %v1107_v19  ;;  %v261_v14 = vsel %vm252_vm12, %v1181_v9, %v249_v12  ;;  %v460_v19 = vld [vmem:[%s1287_s10] sm:$0xff] }
 0x16c   :  { %v808_v15 = vsel %vm175_vm5, 1.0, %v998_v4  ;;  %v464_v21 = vpack.c.bf16 %v461_v20, %v460_v19 }
 0x16d   :  { %v1193_v17 = vpack.c.bf16 %v808_v15, %v808_v15 }
 0x16e   :  { %v247_v11 = vpop.permute.xlu1 %246  ;;  %885 = vmatprep.subr.bf16.mxu0 %v464_v21 }
 0x16f   :  { %v258_v13 = vsel %vm252_vm12, %v1183_v10, %v247_v11  ;;  %886 = vmatpush3.bf16.msra.mxu0 %v464_v21 }
 0x170   :  { %878 = vmatmul.mubr.msk.bf16.vlgmr.msra.gmra.mrb[0].mxu1 %vm322_vm13, %v258_v13  ;;  %887 = vmatprep.subr.bf16.mxu0 %v465_v24 }
 0x171   :  { %881 = vmatprep.mubr.msk.bf16.mxu1 %vm322_vm13, %v261_v14 }
 0x172   :  { %v251_v16 = vpop.permute.xlu1 %250 }
 0x173   :  { %v264_v18 = vsel %vm252_vm12, %v1193_v17, %v251_v16  ;;  %888 = vmatpush3.bf16.msra.mxu0 %v465_v24 }
 0x176   :  { %v282_v26 = vpop.permute.xlu1 %281 }
 0x177   :  { %v316_v38 = vmul.f32 %v816_v28, %v282_v26 }
 0x178   :  { %882 = vmatmul.mubr.msk.bf16.gmra.mrb[4].mxu1 %vm322_vm13, %v264_v18 }
 0x179   :  { %905 = vmatprep.mubr.msk.bf16.mxu1 %vm997_vm0, %v998_v4  ;;  %vm135_vm0 = vcmask 23552  }
 0x17a   :  { %v292_v29 = vpop.permute.xlu1 %291  ;;  %136 = vst.msk [vmem:[#allocation3] sm:$0xff] %vm135_vm0, %v998_v4 }
 0x17b   :  { %v318_v35 = vmul.f32 %v816_v28, %v292_v29 }
 0x17e   :  { %v302_v52 = vpop.permute.xlu1 %301 }
 0x17f   :  { %v320_v60 = vmul.f32 %v816_v28, %v302_v52 }
 0x243   :  { %v879_v33 = vpop.f32.mrb[0].mxu1 }
 0x244   :  { %v374_v36 = vadd.f32 %v879_v33, %v317_v30  ;;  %v365_v37 = vpop.f32.mrb[1].mxu1 }
 0x245   :  { %v366_v39 = vadd.f32 %v365_v37, %v315_v31  ;;  %v880_v40 = vpop.f32.mrb[2].mxu1 }
 0x246   :  { %v402_v41 = vadd.f32 %v821_v34, %v374_v36  ;;  %v377_v42 = vadd.f32 %v880_v40, %v318_v35  ;;  %v368_v43 = vpop.f32.mrb[3].mxu1 }
 0x247   :  { %v400_v44 = vadd.f32 %v821_v34, %v366_v39  ;;  %v369_v45 = vadd.f32 %v368_v43, %v316_v38 }
 0x248   :  { %v824_v46 = vmul.f32 -1.442695, %v402_v41  ;;  %v403_v47 = vadd.f32 %v821_v34, %v377_v42 }
 0x249   :  { %v822_v49 = vmul.f32 -1.442695, %v400_v44  ;;  %v401_v50 = vadd.f32 %v821_v34, %v369_v45 }
 0x24a   :  { %926 = vpow2.f32 %v824_v46  ;;  %v825_v53 = vmul.f32 -1.442695, %v403_v47 }
 0x24b   :  { %928 = vpow2.f32 %v822_v49  ;;  %v823_v55 = vmul.f32 -1.442695, %v401_v50  ;;  %v883_v57 = vpop.f32.mrb[4].mxu1 }
 0x24c   :  { %930 = vpow2.f32 %v825_v53  ;;  %v390_v58 = vadd.f32 %v883_v57, %v321_v51  ;;  %v381_v59 = vpop.f32.mrb[5].mxu1 }
 0x24d   :  { %932 = vpow2.f32 %v823_v55  ;;  %v382_v61 = vadd.f32 %v381_v59, %v319_v54  ;;  %v884_v62 = vpop.f32.mrb[6].mxu1 }
 0x24e   :  { %v406_v63 = vadd.f32 %v821_v34, %v390_v58  ;;  %v384_v0 = vpop.f32.mrb[7].mxu1 }
 0x24f   :  { %v404_v1 = vadd.f32 %v821_v34, %v382_v61  ;;  %v385_v2 = vadd.f32 %v384_v0, %v320_v60 }
 0x250   :  { %v828_v3 = vmul.f32 -1.442695, %v406_v63 }
 0x251   :  { %v826_v5 = vmul.f32 -1.442695, %v404_v1  ;;  %v405_v6 = vadd.f32 %v821_v34, %v385_v2 }
 0x252   :  { %934 = vpow2.f32 %v828_v3 }
 0x253   :  { %936 = vpow2.f32 %v826_v5  ;;  %v827_v7 = vmul.f32 -1.442695, %v405_v6 }
 0x254   :  { %v927_v8 = vpop.eup %926 }
 0x255   :  { %v929_v11 = vpop.eup %928  ;;  %v430_v12 = vadd.f32 1.0, %v927_v8  ;;  %938 = vpow2.f32 %v827_v7 }
 0x256   :  { %v931_v13 = vpop.eup %930  ;;  %v428_v14 = vadd.f32 1.0, %v929_v11 }
 0x257   :  { %v933_v15 = vpop.eup %932  ;;  %940 = vrcp.f32 %v430_v12  ;;  %v431_v16 = vadd.f32 1.0, %v931_v13 }
 0x258   :  { %942 = vrcp.f32 %v428_v14  ;;  %v429_v18 = vadd.f32 1.0, %v933_v15 }
 0x259   :  { %944 = vrcp.f32 %v431_v16 }
 0x25a   :  { %946 = vrcp.f32 %v429_v18 }
 0x25c   :  { %v935_v19 = vpop.eup %934 }
 0x25d   :  { %v937_v20 = vpop.eup %936  ;;  %v434_v21 = vadd.f32 1.0, %v935_v19 }
 0x25e   :  { %v432_v22 = vadd.f32 1.0, %v937_v20 }
 0x25f   :  { %v939_v23 = vpop.eup %938  ;;  %948 = vrcp.f32 %v434_v21 }
 0x260   :  { %950 = vrcp.f32 %v432_v22  ;;  %v433_v24 = vadd.f32 1.0, %v939_v23  ;;  %v841_v22 = vld [vmem:[%s1290_s11] ss:$0 sm:$0xff] }
 0x261   :  { %v941_v25 = vpop.eup %940 }
 0x262   :  { %v943_v26 = vpop.eup %942  ;;  %952 = vrcp.f32 %v433_v24  ;;  %v451_v29 = vmul.f32 %v941_v25, %v402_v41  ;;  %v829_v41 = vld [vmem:[%s1289_s9 + $0x1] ss:$0 sm:$0xff] }
 0x263   :  { %v945_v27 = vpop.eup %944  ;;  %v449_v31 = vmul.f32 %v943_v26, %v400_v44 }
 0x264   :  { %v947_v28 = vpop.eup %946  ;;  %v452_v30 = vmul.f32 %v945_v27, %v403_v47 }
 0x265   :  { %v450_v32 = vmul.f32 %v947_v28, %v401_v50 }
 0x266   :  { %v457_v33 = vpack.c.bf16 %v452_v30, %v451_v29 }
 0x267   :  { %v456_v34 = vpack.c.bf16 %v450_v32, %v449_v31 }
 0x269   :  { %v949_v35 = vpop.eup %948  ;;  %889 = vmatprep.mubr.msk.bf16.mxu0 %vm51_vm1, %v456_v34 }
 0x26a   :  { %v951_v36 = vpop.eup %950  ;;  %890 = vmatmul.mubr.msk.bf16.vlgmr.msra.gmra.mrb[4].mxu0 %vm51_vm1, %v457_v33  ;;  %v455_v38 = vmul.f32 %v949_v35, %v406_v63 }
 0x26b   :  { %v453_v39 = vmul.f32 %v951_v36, %v404_v1 }
 0x26c   :  { %v953_v37 = vpop.eup %952  ;;  %v459_v43 = vpack.c.bf16 %v455_v38, %v455_v38 }
 0x26d   :  { %v454_v40 = vmul.f32 %v953_v37, %v405_v6 }
 0x26f   :  { %v458_v42 = vpack.c.bf16 %v454_v40, %v453_v39 }
 0x271   :  { %893 = vmatprep.mubr.msk.bf16.mxu0 %vm51_vm1, %v458_v42 }
 0x272   :  { %894 = vmatmul.mubr.msk.bf16.gmra.mrb[8].mxu0 %vm51_vm1, %v459_v43 }
 0x33d   :  { %v891_v44 = vpop.f32.mrb[4].mxu0 }
 0x33e   :  { %v527_v45 = vadd.f32 %v891_v44, %v829_v41  ;;  %v518_v46 = vpop.f32.mrb[5].mxu0 }
 0x33f   :  { %v519_v47 = vadd.f32 %v829_v41, %v518_v46  ;;  %v892_v48 = vpop.f32.mrb[6].mxu0 }
 0x340   :  { %v836_v49 = vmul.f32 -1.442695, %v527_v45  ;;  %v530_v50 = vadd.f32 %v892_v48, %v829_v41  ;;  %v521_v51 = vpop.f32.mrb[7].mxu0 }
 0x341   :  { %v834_v52 = vmul.f32 -1.442695, %v519_v47  ;;  %v522_v53 = vadd.f32 %v829_v41, %v521_v51  ;;  %v666_v51 = vld [vmem:[%s1286_s3 + $0x30] sm:$0xff] }
 0x342   :  { %954 = vpow2.f32 %v836_v49  ;;  %v837_v54 = vmul.f32 -1.442695, %v530_v50 }
 0x343   :  { %956 = vpow2.f32 %v834_v52  ;;  %v835_v55 = vmul.f32 -1.442695, %v522_v53  ;;  %v789_v52 = vld [vmem:[%s1291_s6] sm:$0xff] }
 0x344   :  { %958 = vpow2.f32 %v837_v54  ;;  %v675_v54 = vpop.permute.xlu0 %674 }
 0x345   :  { %960 = vpow2.f32 %v835_v55  ;;  %v895_v57 = vpop.f32.mrb[8].mxu0 }
 0x346   :  { %v543_v58 = vadd.f32 %v895_v57, %v829_v41  ;;  %v534_v59 = vpop.f32.mrb[9].mxu0 }
 0x347   :  { %v535_v60 = vadd.f32 %v829_v41, %v534_v59  ;;  %v896_v61 = vpop.f32.mrb[10].mxu0 }
 0x348   :  { %v840_v62 = vmul.f32 -1.442695, %v543_v58  ;;  %v537_v63 = vpop.f32.mrb[11].mxu0  ;;  %v690_v57 = vpop.permute.xlu0 %689 }
 0x349   :  { %v838_v0 = vmul.f32 -1.442695, %v535_v60  ;;  %v538_v1 = vadd.f32 %v829_v41, %v537_v63 }
 0x34a   :  { %962 = vpow2.f32 %v840_v62 }
 0x34b   :  { %964 = vpow2.f32 %v838_v0  ;;  %v839_v2 = vmul.f32 -1.442695, %v538_v1  ;;  %v646_v0 = vld [vmem:[%s1292_s1] sm:$0xff] }
 0x34c   :  { %v955_v3 = vpop.eup %954 }
 0x34d   :  { %v957_v5 = vpop.eup %956  ;;  %v571_v6 = vadd.f32 1.0, %v955_v3  ;;  %966 = vpow2.f32 %v839_v2  ;;  %v647_v3 = vld [vmem:[%s1292_s1 + $0x8] sm:$0xff] }
 0x34e   :  { %v959_v7 = vpop.eup %958  ;;  %v569_v8 = vadd.f32 1.0, %v957_v5 }
 0x34f   :  { %v961_v11 = vpop.eup %960  ;;  %968 = vrcp.f32 %v571_v6  ;;  %v572_v12 = vadd.f32 1.0, %v959_v7 }
 0x350   :  { %970 = vrcp.f32 %v569_v8  ;;  %v570_v13 = vadd.f32 1.0, %v961_v11  ;;  %v649_v11 = vld [vmem:[%s1292_s1 + $0x18] sm:$0xff] }
 0x351   :  { %972 = vrcp.f32 %v572_v12  ;;  %v648_v12 = vld [vmem:[%s1292_s1 + $0x10] sm:$0xff] }
 0x352   :  { %974 = vrcp.f32 %v570_v13 }
 0x354   :  { %v963_v14 = vpop.eup %962 }
 0x355   :  { %v965_v15 = vpop.eup %964  ;;  %v575_v16 = vadd.f32 1.0, %v963_v14 }
 0x356   :  { %v573_v18 = vadd.f32 1.0, %v965_v15 }
 0x357   :  { %v967_v19 = vpop.eup %966  ;;  %976 = vrcp.f32 %v575_v16 }
 0x358   :  { %978 = vrcp.f32 %v573_v18  ;;  %v574_v20 = vadd.f32 1.0, %v967_v19 }
 0x359   :  { %v969_v21 = vpop.eup %968 }
 0x35a   :  { %v971_v23 = vpop.eup %970  ;;  %v592_v24 = vmul.f32 %v969_v21, %v527_v45  ;;  %980 = vrcp.f32 %v574_v20 }
 0x35b   :  { %v973_v25 = vpop.eup %972  ;;  %v590_v26 = vmul.f32 %v971_v23, %v519_v47 }
 0x35c   :  { %v975_v27 = vpop.eup %974  ;;  %v593_v28 = vmul.f32 %v973_v25, %v530_v50  ;;  %v606_v29 = vmul.f32 %v841_v22, %v592_v24  ;;  %v665_v50 = vld [vmem:[%s1286_s3 + $0x28] sm:$0xff] }
 0x35d   :  { %v591_v30 = vmul.f32 %v975_v27, %v522_v53  ;;  %v604_v31 = vmul.f32 %v841_v22, %v590_v26  ;;  %v670_v53 = vpop.permute.xlu1 %669  ;;  %v651_v25 = vld [vmem:[%s1292_s1 + $0x28] sm:$0xff] }
 0x35e   :  { %v617_v32 = vsel %vm51_vm1, %v606_v29, 0.0  ;;  %v607_v35 = vmul.f32 %v841_v22, %v593_v28  ;;  %v650_v29 = vld [vmem:[%s1292_s1 + $0x20] sm:$0xff] }
 0x35f   :  { %618 = vadd.xlane.f32.xlu0 %v617_v32  ;;  %v611_v33 = vsel %vm51_vm1, %v604_v31, 0.0  ;;  %v605_v34 = vmul.f32 %v841_v22, %v591_v30 }
 0x360   :  { %612 = vadd.xlane.f32.xlu1 %v611_v33  ;;  %v620_v42 = vsel %vm51_vm1, %v607_v35, 0.0 }
 0x361   :  { %v977_v36 = vpop.eup %976  ;;  %v614_v37 = vsel %vm51_vm1, %v605_v34, 0.0  ;;  %v680_v55 = vpop.permute.xlu1 %679 }
 0x362   :  { %v979_v38 = vpop.eup %978  ;;  %v596_v39 = vmul.f32 %v977_v36, %v543_v58 }
 0x363   :  { %v594_v40 = vmul.f32 %v979_v38, %v535_v60  ;;  %615 = vadd.xlane.f32.xlu0 %v614_v37 }
 0x364   :  { %v981_v43 = vpop.eup %980  ;;  %621 = vadd.xlane.f32.xlu1 %v620_v42  ;;  %v610_v41 = vmul.f32 %v841_v22, %v596_v39 }
 0x365   :  { %v595_v44 = vmul.f32 %v981_v43, %v538_v1  ;;  %v608_v46 = vmul.f32 %v841_v22, %v594_v40  ;;  %v685_v58 = vpop.permute.xlu1 %684 }
 0x366   :  { %v629_v45 = vsel %vm51_vm1, %v610_v41, 0.0 }
 0x367   :  { %630 = vadd.xlane.f32.xlu0 %v629_v45  ;;  %v609_v47 = vmul.f32 %v841_v22, %v595_v44  ;;  %v623_v49 = vsel %vm51_vm1, %v608_v46, 0.0  ;;  %v652_v22 = vld [vmem:[%s1292_s1 + $0x30] sm:$0xff]  ;;  %v709_v45 = vld [vmem:[#allocation3] sm:$0xff] }
 0x369   :  { %v626_v48 = vsel %vm51_vm1, %v609_v47, 0.0  ;;  %vm734_vm1 = vcmask 1043456  }
 0x36a   :  { %627 = vadd.xlane.f32.xlu1 %v626_v48 }
 0x36b   :  { %624 = vadd.xlane.f32.xlu0 %v623_v49 }
 0x37b   :  { %694 = vperm.xlu1 %924, %v665_v50  }
 0x381   :  { %699 = vperm.xlu0 %925, %v666_v51  }
 0x385   :  { %792 = vperm.xlu0 %925, %v789_v52   ;;  %v787_v52 = vld [vmem:[%s1293_s5] sm:$0xff] }
 0x39e   :  { %714 = vxpose.xlu1.c.b16.start [1/4] (short) (narrow) %v1155_v56, 16 }
 0x3a2   :  { %715 = vxpose.xlu1.c.b16.cont [2/4] (short) (narrow) %v1183_v10, 16 }
 0x3a6   :  { %716 = vxpose.xlu1.c.b16.cont [3/4] (short) (narrow) %v1181_v9, 16 }
 0x3aa   :  { %717 = vxpose.xlu1.c.b16.end [4/4] (short) (narrow) %v1193_v17, 16 }
 0x3ec   :  { %v619_v59 = vpop.xlane.xlu0 %618 }
 0x3ed   :  { %v613_v60 = vpop.xlane.xlu1 %612 }
 0x3ee   :  { %982 = vtanh.f32 %v613_v60 }
 0x3ef   :  { %984 = vtanh.f32 %v619_v59 }
 0x3f0   :  { %v616_v61 = vpop.xlane.xlu0 %615 }
 0x3f1   :  { %986 = vtanh.f32 %v616_v61  ;;  %v622_v62 = vpop.xlane.xlu1 %621 }
 0x3f2   :  { %988 = vtanh.f32 %v622_v62 }
 0x3f4   :  { %v631_v56 = vpop.xlane.xlu0 %630 }
 0x3f5   :  { %990 = vtanh.f32 %v631_v56 }
 0x3f7   :  { %v628_v10 = vpop.xlane.xlu1 %627 }
 0x3f8   :  { %v983_v63 = vpop.eup %982  ;;  %992 = vtanh.f32 %v628_v10  ;;  %v625_v9 = vpop.xlane.xlu0 %624 }
 0x3f9   :  { %v985_v17 = vpop.eup %984  ;;  %v639_v1 = vmul.f32 10.0, %v983_v63  ;;  %994 = vtanh.f32 %v625_v9 }
 0x3fa   :  { %v641_v6 = vmul.f32 10.0, %v985_v17 }
 0x3fb   :  { %v987_v2 = vpop.eup %986  ;;  %v653_v7 = vmul.f32 %v646_v0, %v639_v1  ;;  %v695_v35 = vpop.permute.xlu1 %694 }
 0x3fc   :  { %v989_v5 = vpop.eup %988  ;;  %v640_v8 = vmul.f32 10.0, %v987_v2  ;;  %v655_v18 = vmul.f32 %v648_v12, %v641_v6 }
 0x3fd   :  { %v642_v13 = vmul.f32 10.0, %v989_v5  ;;  %v702_v19 = vmul.f32 %v670_v53, %v653_v7 }
 0x3fe   :  { %v654_v14 = vmul.f32 %v647_v3, %v640_v8  ;;  %v704_v31 = vmul.f32 %v680_v55, %v655_v18 }
 0x3ff   :  { %v991_v15 = vpop.eup %990  ;;  %v656_v16 = vmul.f32 %v649_v11, %v642_v13 }
 0x400   :  { %v703_v20 = vmul.f32 %v675_v54, %v654_v14  ;;  %v645_v21 = vmul.f32 10.0, %v991_v15  ;;  %v700_v36 = vpop.permute.xlu0 %699 }
 0x401   :  { %v705_v24 = vmul.f32 %v685_v58, %v656_v16 }
 0x402   :  { %v993_v23 = vpop.eup %992  ;;  %v710_v26 = vpack.c.bf16 %v703_v20, %v702_v19  ;;  %v659_v30 = vmul.f32 %v652_v22, %v645_v21 }
 0x403   :  { %v995_v27 = vpop.eup %994  ;;  %v644_v28 = vmul.f32 10.0, %v993_v23  ;;  %v711_v37 = vpack.c.bf16 %v705_v24, %v704_v31 }
 0x404   :  { %v643_v32 = vmul.f32 10.0, %v995_v27  ;;  %898 = vmatpush3.bf16.msra.mxu1 %v710_v26  ;;  %v708_v39 = vmul.f32 %v700_v36, %v659_v30  ;;  %v722_v44 = vpop.trf.xlu1  ;;  %v793_v54 = vpop.permute.xlu0 %792 }
 0x405   :  { %v658_v33 = vmul.f32 %v651_v25, %v644_v28  ;;  %899 = vmatprep.subr.bf16.mxu1 %v998_v4 }
 0x406   :  { %v657_v34 = vmul.f32 %v650_v29, %v643_v32  ;;  %v713_v43 = vpack.c.bf16 %v708_v39, %v708_v39 }
 0x407   :  { %v707_v38 = vmul.f32 %v695_v35, %v658_v33 }
 0x408   :  { %v706_v40 = vmul.f32 %v690_v57, %v657_v34  ;;  %900 = vmatpush3.bf16.msra.mxu1 %v711_v37  ;;  %v736_v41 = vsel %vm734_vm1, %v713_v43, 0 }
 0x409   :  { %901 = vmatprep.subr.bf16.mxu1 %v998_v4 }
 0x40a   :  { %v712_v42 = vpack.c.bf16 %v707_v38, %v706_v40 }
 0x40c   :  { %902 = vmatpush3.bf16.msra.mxu1 %v712_v42 }
 0x40d   :  { %903 = vmatprep.subr.bf16.mxu1 %v998_v4 }
 0x410   :  { %904 = vmatpush3.bf16.msra.mxu1 %v736_v41 }
 0x413   :  { %906 = vmatmul.mubr.msk.bf16.vlgmr.msra.gmra.mrb[8].mxu1 %vm730_vm6, %v722_v44 }
 0x4e6   :  { %v772_v46 = vpop.f32.mrb[8].mxu1 }
 0x4e7   :  { %v778_v47 = vadd.f32 %v772_v46, %v709_v45  ;;  %v907_v48 = vpop.f32.mrb[9].mxu1 }
 0x4e8   :  { %v775_v49 = vpop.f32.mrb[10].mxu1 }
 0x4e9   :  { %780 = vst.msk [vmem:[#allocation3] sm:$0xff] %vm135_vm0, %v778_v47  ;;  %v908_v50 = vpop.f32.mrb[11].mxu1 }
 0x4f0   :  { %v784_v51 = vld [vmem:[#allocation3] sm:$0xff] }
 0x4f1   :  { %v786_v53 = vmul.f32 0.01, %v784_v51 }
 0x4f3   :  { %v788_v4 = vadd.f32 %v787_v52, %v786_v53 }
 0x4f5   :  { %v795_v55 = vmul.f32 %v793_v54, %v788_v4 }
 0x4f7   :  { %796 = vst.msk [vmem:[%s1294_s12] sm:$0xff] %vm135_vm0, %v795_v55 }

</bundles_post_ra>
